<compile_context>
chip_gen: v6e
topology: v6e:2x2x1
jax: 0.10.0
libtpu: 0.0.40
codegen_flags: <defaults>
</compile_context>

<pallas_src>
import functools

import jax
import jax.numpy as jnp
from jax.experimental import pallas as pl
from jax.experimental.pallas import tpu as pltpu


def _eig_act_kernel(w_ref, u_ref, o_ref, *, activation, eps):
    """o[b] = U[b] diag(f(w[b])) U[b]^T for every matrix b in the block.

    w_ref: (TB, 1, N)  eigenvalues, float32
    u_ref: (TB, N, N)  eigenvectors as columns (f32, or bf16 when x is bf16)
    o_ref: (TB, N, N)  output SPD matrices (x.dtype)
    """
    w = w_ref[...]                                     # (TB, 1, N) float32
    if activation == "rectify":
        fw = jnp.maximum(w, jnp.asarray(eps, dtype=w.dtype))
    elif activation == "log":
        fw = jnp.log(w)
    else:                                              # "exp"
        fw = jnp.exp(w)

    u = u_ref[...]                                     # (TB, N, N)
    # Scale column j of each U by f(w_j) in f32 (broadcast of (TB,1,N) over the
    # row/sublane axis), then drop back to the matmul dtype (no-op for f32).
    scaled = (u.astype(jnp.float32) * fw).astype(u.dtype)
    # U diag(fw) U^T: contracting the last axis of *both* operands (q.k^T form)
    # feeds the MXU without an explicit transpose / relayout of u.
    y = jnp.einsum("bij,bkj->bik", scaled, u,
                   preferred_element_type=jnp.float32)
    o_ref[...] = y.astype(o_ref.dtype)


def _ceil_div(a, b):
    return -(-a // b)


def _round_up(a, b):
    return _ceil_div(a, b) * b


def _plan_blocks(batch, n, u_itemsize, out_itemsize,
                 target_vmem_bytes=16 * 1024 * 1024):
    """Pick the batch tile TB, grid size and VMEM limit from *physical* bytes.

    A (TB, N, N) block physically occupies TB * roundup(N,8) * roundup(N,128)
    elements in VMEM (the (8,128) vreg tiling) -- up to ~8x the logical bytes
    for small N -- so the tile is sized against that padded footprint.
    """
    mat_phys = _round_up(n, 8) * _round_up(n, 128)      # elems per (N,N) matrix
    w_phys = 8 * _round_up(n, 128)                      # padded (1,N) tile
    per_elem = (2 * mat_phys * u_itemsize               # u block, double-buffered
                + 2 * mat_phys * out_itemsize           # out block, double-buffered
                + 2 * mat_phys * 4                      # f32 'scaled' + 'y' temps
                + 2 * w_phys * 4)                       # w block, double-buffered
    tb_max = max(1, target_vmem_bytes // per_elem)

    num_blocks = _ceil_div(batch, min(tb_max, batch))
    if num_blocks == 1 and batch >= 2:
        num_blocks = 2          # >= 2 grid steps keeps both v7x TensorCores busy
    elif num_blocks > 2 and num_blocks % 2 == 1:
        num_blocks += 1         # even step count balances the two cores
    tb = _ceil_div(batch, num_blocks)
    num_blocks = _ceil_div(batch, tb)   # drop any fully-empty trailing block

    footprint = tb * per_elem
    # Explicit scoped-VMEM limit with headroom; well under v7x's 64 MiB physical.
    vmem_limit = int(min(max(footprint + (4 << 20), 16 << 20), 48 << 20))
    # TODO(synk): for very large N (single-matrix footprint beyond the limit)
    # the (N, N) dims themselves would need tiling with an inner reduction axis.
    return tb, num_blocks, vmem_limit


def eigen_activation(x, activation="rectify", eps=1e-5):
    """JAX/Pallas equivalent of spdnet EigenActivation.forward.

    x: (..., N, N) batch of SPD matrices. Returns array of the same shape/dtype.
    """
    if activation not in {"rectify", "log", "exp"}:
        raise ValueError(
            f"activation must be one of 'rectify', 'log', or 'exp'. Got '{activation}'.")

    orig_shape = x.shape
    n = orig_shape[-1]
    if orig_shape[-2] != n:
        raise ValueError("input must have shape (..., N, N)")
    xb = x.reshape((-1, n, n))
    b = xb.shape[0]

    # Symmetric eigendecomposition in float32 for accuracy even if x is bf16.
    # TODO(synk): eigh itself has no Pallas equivalent; it stays in plain XLA.
    w, u = jnp.linalg.eigh(xb.astype(jnp.float32))      # w: (B, N), u: (B, N, N)

    # (B, 1, N): the batch tile lands on a leading (unconstrained) block dim.
    w = w.reshape(b, 1, n)

    # bf16 inputs: read U in bf16 and run the MXU in bf16 with f32 accumulation.
    mx_dtype = jnp.bfloat16 if x.dtype == jnp.bfloat16 else jnp.float32
    u = u.astype(mx_dtype)

    tb, num_blocks, vmem_limit = _plan_blocks(
        b, n,
        u_itemsize=jnp.dtype(mx_dtype).itemsize,
        out_itemsize=jnp.dtype(x.dtype).itemsize)

    kernel = functools.partial(_eig_act_kernel, activation=activation,
                               eps=float(eps))

    out_itemsize = jnp.dtype(x.dtype).itemsize
    flops = 2 * b * n ** 3 + 2 * b * n * n              # matmul + column scale
    transcendentals = b * n if activation in ("log", "exp") else 0
    bytes_accessed = (b * n * n * jnp.dtype(mx_dtype).itemsize   # u in
                      + b * n * 4                                # w in
                      + b * n * n * out_itemsize)                # out

    out = pl.pallas_call(
        kernel,
        out_shape=jax.ShapeDtypeStruct((b, n, n), x.dtype),
        grid_spec=pltpu.PrefetchScalarGridSpec(
            num_scalar_prefetch=0,
            grid=(num_blocks,),
            in_specs=[
                pl.BlockSpec((tb, 1, n), lambda i: (i, 0, 0)),
                pl.BlockSpec((tb, n, n), lambda i: (i, 0, 0)),
            ],
            out_specs=pl.BlockSpec((tb, n, n), lambda i: (i, 0, 0)),
        ),
        compiler_params=pltpu.CompilerParams(
            dimension_semantics=("parallel",),
            vmem_limit_bytes=vmem_limit,
        ),
        cost_estimate=pl.CostEstimate(
            flops=flops,
            transcendentals=transcendentals,
            bytes_accessed=bytes_accessed,
        ),
    )(w, u)

    return out.reshape(orig_shape)


def _reference(x, activation="rectify", eps=1e-5):
    w, u = jnp.linalg.eigh(x.astype(jnp.float32))
    if activation == "rectify":
        fw = jnp.maximum(w, eps)
    elif activation == "log":
        fw = jnp.log(w)
    else:
        fw = jnp.exp(w)
    y = jnp.einsum("...ij,...j,...kj->...ik", u, fw, u)
    return y.astype(x.dtype)


if __name__ == "__main__":
    key = jax.random.PRNGKey(0)
    B0, B1, N = 2, 4, 16
    a = 0.25 * jax.random.normal(key, (B0, B1, N, N), dtype=jnp.float32)
    # Build SPD input: A A^T + 0.1 I
    x = jnp.einsum("...ij,...kj->...ik", a, a) + 0.1 * jnp.eye(N, dtype=jnp.float32)

    ok = True
    for act in ("rectify", "log", "exp"):
        y = jax.block_until_ready(eigen_activation(x, activation=act, eps=1e-5))
        y_ref = _reference(x, activation=act, eps=1e-5)
        err = float(jnp.max(jnp.abs(y - y_ref)))
        tol = 1e-2 * (1.0 + float(jnp.max(jnp.abs(y_ref))))
        if not (err < tol) or y.shape != x.shape or y.dtype != x.dtype:
            ok = False

    if ok:
        print("KERNEL_OK")
</pallas_src>

<mosaic_0001>
module attributes {stable_mosaic.version = 11 : i64} {
  func.func @_eig_act_kernel(%arg0: i32, %arg1: memref<4x1x16xf32, #tpu.memory_space<vmem>>, %arg2: memref<4x16x16xf32, #tpu.memory_space<vmem>>, %arg3: memref<4x16x16xf32, #tpu.memory_space<vmem>>) attributes {dimension_semantics = [#tpu.dimension_semantics<parallel>], iteration_bounds = array<i64: 2>, scalar_prefetch = 0 : i64, scratch_operands = 0 : i64, tpu.core_type = #tpu.core_type<tc>, window_params = [{transform_indices = @transform_0, window_bounds = array<i64: 4, 1, 16>}, {transform_indices = @transform_1, window_bounds = array<i64: 4, 16, 16>}, {transform_indices = @transform_2, window_bounds = array<i64: 4, 16, 16>}]} {
    %c0 = arith.constant 0 : index
    %c0_0 = arith.constant 0 : index
    %c0_1 = arith.constant 0 : index
    %0 = vector.load %arg1[%c0, %c0_0, %c0_1] : memref<4x1x16xf32, #tpu.memory_space<vmem>>, vector<4x1x16xf32>
    %cst = arith.constant 9.99999974E-6 : f32
    %1 = vector.broadcast %cst : f32 to vector<4x1x16xf32>
    %2 = arith.maximumf %0, %1 : vector<4x1x16xf32>
    %c0_2 = arith.constant 0 : index
    %c0_3 = arith.constant 0 : index
    %c0_4 = arith.constant 0 : index
    %3 = vector.load %arg2[%c0_2, %c0_3, %c0_4] : memref<4x16x16xf32, #tpu.memory_space<vmem>>, vector<4x16x16xf32>
    %4 = vector.broadcast %2 : vector<4x1x16xf32> to vector<4x16x16xf32>
    %5 = arith.mulf %3, %4 : vector<4x16x16xf32>
    "tpu.trace_start"() <{level = 10 : i32, message = "bij,bkj->bik"}> : () -> ()
    %cst_5 = arith.constant dense<0.000000e+00> : vector<4x16x16xf32>
    %6 = tpu.matmul %5, %3, %cst_5 {dimension_numbers = #tpu.dot_dimension_numbers<[2], [2], [1], [1], [0, 0, 0, 1, 1, 1], [0], [0]>} : vector<4x16x16xf32>, vector<4x16x16xf32>, vector<4x16x16xf32> -> vector<4x16x16xf32>
    "tpu.trace_stop"() : () -> ()
    %c0_6 = arith.constant 0 : index
    %c0_7 = arith.constant 0 : index
    %c0_8 = arith.constant 0 : index
    %7 = vector.load %arg3[%c0_6, %c0_7, %c0_8] : memref<4x16x16xf32, #tpu.memory_space<vmem>>, vector<4x16x16xf32>
    tpu.vector_store %arg3[%c0_6, %c0_7, %c0_8], %6 {strides = array<i32>} : memref<4x16x16xf32, #tpu.memory_space<vmem>>, vector<4x16x16xf32>,
    return
  }
  func.func @transform_0(%arg0: i32) -> (i32, i32, i32) {
    %c0_i32 = arith.constant 0 : i32
    %c0_i32_0 = arith.constant 0 : i32
    %c0_i32_1 = arith.constant 0 : i32
    return %arg0, %c0_i32, %c0_i32_0 : i32, i32, i32
  }
  func.func @transform_1(%arg0: i32) -> (i32, i32, i32) {
    %c0_i32 = arith.constant 0 : i32
    %c0_i32_0 = arith.constant 0 : i32
    %c0_i32_1 = arith.constant 0 : i32
    return %arg0, %c0_i32, %c0_i32_0 : i32, i32, i32
  }
  func.func @transform_2(%arg0: i32) -> (i32, i32, i32) {
    %c0_i32 = arith.constant 0 : i32
    %c0_i32_0 = arith.constant 0 : i32
    %c0_i32_1 = arith.constant 0 : i32
    return %arg0, %c0_i32, %c0_i32_0 : i32, i32, i32
  }
}

</mosaic_0001>

<bundles_post_ra>
// kernel: tpu_custom_call.1
= control target key start
LH: loop header
LB: loop body
LE: loop exit
PB: predicated region body
PF: predicated region fallthrough
CT: control target
= control target key end

     0   :  { %7 = vsyncpa [#allocation3], 0  ;;  %s1269_s0 = inlined_call_operand.hbm [shape: f32[8,1,16], index: 0, kind: input, shape index: {}]   ;;  %s1270_s1 = inlined_call_operand.hbm [shape: f32[8,16,16], index: 1, kind: input, shape index: {}]   ;;  %s1271_s2 = inlined_call_operand.hbm [shape: f32[8,16,16], index: 2, kind: output, shape index: {}]  }
   0x1   :  { %9 = vsyncpa [#allocation3 + $0x1], 0 }
   0x2   :  { %10 = vsyncpa [#allocation6], 0 }
   0x3   :  { %12 = vsyncpa [#allocation6 + $0x1], 0 }
   0x4   :  { %13 = vsyncpa [#allocation4], 0 }
   0x5   :  { %15 = vsyncpa [#allocation4 + $0x1], 0  ;;  %s1014_s9 = smov 0   ;;  %s1016_s10 = smov 0  }
   0x6   :  { %s1018_s11 = smov 0   ;;  %s1020_s12 = smov 0  }
   0x7 LB: > { %s1035_s13 = sadd.s32 4294967295, %s988_s12   ;;  %s722_s14 = sadd.s32 4294967294, %s988_s12   ;;  %s988_s12 = sphi %s1020_s12, %s1287_s12   ;;  %s984_s11 = sphi %s1018_s11, %s1286_s11   ;;  %s980_s10 = sphi %s1016_s10, %s1285_s10   ;;  %s976_s9 = sphi %s1014_s9, %s1284_s9  }
   0x8   : > { %s1039_s15 = sadd.s32 1, %s988_s12   ;;  %s28_s16 = sadd.s32 1, %s984_s11 }
   0x9   : > { %s25_s17 = ssub.s32 %s988_s12, %s1039_s15  ;;  %p35_p0 = scmp.ne.s32.totalorder %s984_s11, %s980_s10 }
   0xa   : > { %p26_p1 = scmp.eq.s32.totalorder %s25_s17, 0  ;;  %p36_p2 = scmp.eq.s32.totalorder %s988_s12, 0 }
   0xb   : > { %p41_p3 = scmp.ne.s32.totalorder %s980_s10, %s976_s9  ;;  %p42_p4 = scmp.eq.s32.totalorder %s1035_s13, 0 }
   0xc   : > { %s1051_s18 = scalar_select %p26_p1, %s984_s11, %s28_s16  }
   0xd   : > { %p1053_p5 = por %p36_p2, %p35_p0  ;;  %p1057_p6 = por %p42_p4, %p41_p3 }
   0xe   : > { %p91_p7 = scmp.eq.s32.totalorder %s1035_s13, 1  ;;  %p97_p8 = scmp.eq.s32.totalorder %s722_s14, 1 }
   0xf   : > { %s1275_s20 = scalar_select %p1057_p6, 1, 0 }
  0x10   : > { %p824_p10 = scmp.lt.s32.totalorder %s988_s12, 2  ;;  %p1064_p11 = por %p91_p7, %p35_p0 }
  0x11   : > { %p1068_p12 = por %p97_p8, %p41_p3  ;;  %s1073_s23 = sand.u32 1, %s984_s11  }
  0x12   : > { %s1276_s21 = scalar_select %p1064_p11, 1, 0 }
  0x13   : > { %s1277_s22 = scalar_select %p1068_p12, 1, 0 }
  0x14   : > { %s758_s24 = sshll.u32 %s988_s12, 6  ;;  %s725_s25 = sshll.u32 %s1073_s23, 2 }
  0x15   : > { %s1080_s28 = scalar_lea.hbm %s1269_s0, %s758_s24  ;;  %s121_s29 = scalar_lea.vmem [#allocation2], %s725_s25 }
  0x16   : > { %s128_s30 = sshll.u32 %s121_s29, 4  ;;  %p1084_p13 = pnand %p824_p10, %p1053_p5  ;;  %s1088_s30 = int_to_ptr.vmem [resolvable:$true] %s128_s30 }
  0x17   : > { %s118_s4 = scalar_lea.sflag [#allocation3], %s1073_s23  ;;  %s864_s5 = scalar_lea.hbm %s1080_s28, 64 }
  0x18   : > { %p865_p0 = scmp.ne.s32.totalorder %s1080_s28, %s864_s5  ;;  %p866_p1 = pneg %p1084_p13 }
  0x19   : > { %s869_s8 = scalar_lea.hbm %s1269_s0, 128  ;;  %p870_p4 = scmp.lt.s32.totalorder %s1080_s28, %s1269_s0 }
  0x1a   : > { %p867_p2 = pnand %p866_p1, %p865_p0  ;;  %p871_p5 = scmp.lt.s32.totalorder %s869_s8, %s864_s5 }
  0x1c   : > { %p868_p3 = pneg %p867_p2  ;;  %p872_p7 = por %p871_p5, %p870_p4 }
  0x1e   : > { %p873_p8 = pnand %p872_p7, %p868_p3 }
  0x20   : > { %876 = shalt.err (!%p873_p8)
}
  0x21   : > { %s877_s17 = scalar_lea.vmem %s1088_s30, 64  ;;  %s990_s19 = smov [#allocation2]  }
  0x22   : > { %p878_p10 = scmp.ne.s32.totalorder %s1088_s30, %s877_s17  ;;  %s882_s24 = sshll.u32 %s990_s19, 4  ;;  %s883_s24 = int_to_ptr.vmem [resolvable:$false] %s882_s24 }
  0x23   : > { %s884_s25 = scalar_lea.vmem %s883_s24, 128  ;;  %p885_p9 = scmp.lt.s32.totalorder %s1088_s30, %s883_s24 }
  0x24   : > { %p880_p0 = pnand %p878_p10, %p866_p1  ;;  %p886_p12 = scmp.lt.s32.totalorder %s884_s25, %s877_s17 }
  0x26   : > { %p881_p2 = pneg %p880_p0  ;;  %p887_p11 = por %p886_p12, %p885_p9 }
  0x28   : > { %p888_p4 = pnand %p887_p11, %p881_p2 }
  0x2a   : > { %891 = shalt.err (!%p888_p4)
}
  0x2b   : > { %s991_s26 = smov 16   ;;  %s992_s27 = smov 1  }
  0x2c   : > { %816 = dma.hbm_to_vmem [thread:$0]  (!%p1084_p13), %s1080_s28, 64, %s1088_s30, %s118_s4, %s991_s26, %s991_s26, %s992_s27  }
  0x2d   : > { %p732_p3 = scmp.ge.s32.totalorder %s988_s12, 1  ;;  %p158_p5 = scmp.lt.s32.totalorder %s988_s12, 3 }
  0x2e   : > { %s728_s29 = sshll.u32 %s1073_s23, 6  ;;  %s760_s6 = sshll.u32 %s988_s12, 10 }
  0x2f   : > { %p1120_p9 = pnand %p732_p3, %p158_p5  ;;  %s142_s7 = scalar_lea.vmem [#allocation5], %s728_s29 }
  0x30   : > { %s150_s8 = sshll.u32 %s142_s7, 4  ;;  %s1128_s17 = scalar_lea.hbm %s1270_s1, %s760_s6  ;;  %s1130_s8 = int_to_ptr.vmem [resolvable:$true] %s150_s8 }
  0x31   : > { %s139_s28 = scalar_lea.sflag [#allocation6], %s1073_s23  ;;  %s892_s30 = scalar_lea.hbm %s1128_s17, 1024 }
  0x32   : > { %p893_p11 = scmp.ne.s32.totalorder %s1128_s17, %s892_s30  ;;  %s897_s24 = scalar_lea.hbm %s1270_s1, 2048 }
  0x33   : > { %p898_p8 = scmp.lt.s32.totalorder %s1128_s17, %s1270_s1  ;;  %p899_p10 = scmp.lt.s32.totalorder %s897_s24, %s892_s30 }
  0x34   : > { %p895_p12 = pnand %p893_p11, %p866_p1 }
  0x35   : > { %p900_p0 = por %p899_p10, %p898_p8 }
  0x36   : > { %p896_p7 = pneg %p895_p12 }
  0x38   : > { %p901_p2 = pnand %p900_p0, %p896_p7 }
  0x3a   : > { %904 = shalt.err (!%p901_p2)
}
  0x3b   : > { %s905_s27 = scalar_lea.vmem %s1130_s8, 1024  ;;  %s993_s29 = smov [#allocation5]  }
  0x3c   : > { %p906_p4 = scmp.ne.s32.totalorder %s1130_s8, %s905_s27  ;;  %s910_s6 = sshll.u32 %s993_s29, 4  ;;  %s911_s6 = int_to_ptr.vmem [resolvable:$false] %s910_s6 }
  0x3d   : > { %s912_s7 = scalar_lea.vmem %s911_s6, 2048  ;;  %p913_p11 = scmp.lt.s32.totalorder %s1130_s8, %s911_s6 }
  0x3e   : > { %p908_p3 = pnand %p906_p4, %p866_p1  ;;  %p914_p12 = scmp.lt.s32.totalorder %s912_s7, %s905_s27 }
  0x40   : > { %p909_p5 = pneg %p908_p3  ;;  %p915_p6 = por %p914_p12, %p913_p11 }
  0x42   : > { %p916_p8 = pnand %p915_p6, %p909_p5 }
  0x44   : > { %919 = shalt.err (!%p916_p8)
}
  0x45   : > { %s994_s14 = smov 128   ;;  %s995_s16 = smov 8  }
  0x46   : > { %819 = dma.hbm_to_vmem [thread:$0]  (!%p1084_p13), %s1128_s17, 1024, %s1130_s8, %s139_s28, %s994_s14, %s994_s14, %s995_s16  }
  0x47   : > { %162 = sbr.rel (%p1120_p9) target bundleno = 308 (0x134), region = 28  ;;  %s1160_s30 = sand.u32 (!%p1120_p9), 1, %s980_s10  }
  0x48   : > { %s733_s4 = sshll.u32 (!%p1120_p9), %s1160_s30, 2  ;;  %s165_s19 = scalar_lea.sflag (!%p1120_p9), [#allocation3], %s1160_s30 }
  0x49   : > { %s168_s24 = scalar_lea.vmem (!%p1120_p9), [#allocation2], %s733_s4  ;;  %p1280_p6 = scmp.ne.s32.totalorder (!%p1120_p9), %s1275_s20, 0 }
  0x4c   : > { %963 = dma.done.wait (%p1280_p6), %s165_s19, 64  }
  0x4d   : > { %965 = vsyncadd (%p1280_p6), %s165_s19, 4294967232  ;;  %s734_s23 = sshll.u32 %s1160_s30, 6  ;;  %s174_s3 = scalar_lea.sflag [#allocation6], %s1160_s30 }
  0x4e   : > { %s1172_s5 = scalar_lea.vmem [#allocation5], %s734_s23 }
  0x4f   : > { %967 = dma.done.wait (%p1280_p6), %s174_s3, 1024  }
  0x50   : > { %969 = vsyncadd (%p1280_p6), %s174_s3, 4294966272  ;;  %v226_v0 = vlaneseq  ;;  %vm254_vm0 = vcmask 130048   ;;  %v215_v2 = vld [vmem:[%s1172_s5 + $0x8] sm:$0xff]  ;;  %v217_v3 = vld [vmem:[%s1172_s5 + $0x18] sm:$0xff]  ;;  %s202_s20 = scalar_lea.vmem [#allocation7], %s734_s23  ;;  %s762_s17 = sshll.u32 %s1035_s13, 10 }
  0x51   : > { %v214_v4 = vld [vmem:[%s1172_s5] sm:$0xff]  ;;  %779 = vmatprep.subr.msk.mxu0 %vm254_vm0, %v215_v2  ;;  %786 = vmatprep.subr.msk.mxu1 %vm254_vm0, %v217_v3  ;;  %v216_v6 = vld [vmem:[%s1172_s5 + $0x10] sm:$0xff]  ;;  %v206_v7 = vld [vmem:[%s168_s24] sm:$0x1]  ;;  %s626_s8 = sshll.u32 %s202_s20, 4  ;;  %s1222_s26 = scalar_lea.hbm %s1271_s2, %s762_s17  ;;  %s1217_s8 = int_to_ptr.vmem [resolvable:$true] %s626_s8 }
  0x52   : > { %v227_v1 = vshrl.u32 %v226_v0, 7  ;;  %v207_v8 = vld [vmem:[%s168_s24 + $0x1] sm:$0x1]  ;;  %780 = vmatpush3.xpose.msk.msra.mxu0 %vm254_vm0, %v215_v2  ;;  %787 = vmatpush3.xpose.msk.msra.mxu1 %vm254_vm0, %v217_v3  ;;  %v210_v9 = vmax.f32 %v206_v7, 1e-05  ;;  %v219_v16 = vld [vmem:[%s1172_s5 + $0x28] sm:$0xff] }
  0x53   : > { %v211_v10 = vmax.f32 %v207_v8, 1e-05  ;;  %v208_v11 = vld [vmem:[%s168_s24 + $0x2] sm:$0x1]  ;;  %781 = vmatprep.subr.msk.mxu0 %vm254_vm0, %v214_v4  ;;  %788 = vmatprep.subr.msk.mxu1 %vm254_vm0, %v216_v6  ;;  %v209_v13 = vld [vmem:[%s168_s24 + $0x3] sm:$0x1] }
  0x54   : > { %v228_v5 = vsub.s32 0, %v227_v1  ;;  %v212_v12 = vmax.f32 %v208_v11, 1e-05  ;;  %v213_v17 = vmax.f32 %v209_v13, 1e-05  ;;  %v221_v18 = vld [vmem:[%s1172_s5 + $0x38] sm:$0xff] }
  0x55   : > { %v218_v20 = vld [vmem:[%s1172_s5 + $0x20] sm:$0xff]  ;;  %v220_v24 = vld [vmem:[%s1172_s5 + $0x30] sm:$0xff]  ;;  %s612_s13 = scalar_lea.sflag [#allocation4], %s1160_s30  ;;  %s920_s27 = scalar_lea.vmem %s1217_s8, 1024 }
  0x56   : > { %v229_v14 = vrot.slane %v210_v9, %v228_v5  ;;  %v233_v15 = vrot.slane %v211_v10, %v228_v5  ;;  %v237_v19 = vrot.slane %v212_v12, %v228_v5  ;;  %782 = vmatpush3.xpose.msk.msra.mxu0 %vm254_vm0, %v214_v4  ;;  %789 = vmatpush3.xpose.msk.msra.mxu1 %vm254_vm0, %v216_v6  ;;  %p921_p13 = scmp.ne.s32.totalorder %s1217_s8, %s920_s27  ;;  %p1281_p1 = scmp.ne.s32.totalorder %s1276_s21, 0 }
  0x57   : > { %793 = vmatprep.subr.msk.mxu0 %vm254_vm0, %v219_v16  ;;  %v241_v26 = vrot.slane %v213_v17, %v228_v5  ;;  %800 = vmatprep.subr.msk.mxu1 %vm254_vm0, %v221_v18  ;;  %s996_s29 = smov [#allocation7]  }
  0x58   : > { %v246_v21 = vmul.f32 %v229_v14, %v214_v4  ;;  %v247_v22 = vmul.f32 %v229_v14, %v215_v2  ;;  %v248_v23 = vmul.f32 %v233_v15, %v216_v6  ;;  %v249_v25 = vmul.f32 %v233_v15, %v217_v3  ;;  %p922_p9 = pnand %p921_p13, %p1281_p1  ;;  %s924_s6 = sshll.u32 %s996_s29, 4  ;;  %s925_s6 = int_to_ptr.vmem [resolvable:$false] %s924_s6 }
  0x59   : > { %v250_v27 = vmul.f32 %v237_v19, %v218_v20  ;;  %v252_v28 = vmul.f32 %v241_v26, %v220_v24  ;;  %v251_v29 = vmul.f32 %v237_v19, %v219_v16  ;;  %v253_v30 = vmul.f32 %v241_v26, %v221_v18  ;;  %s926_s7 = scalar_lea.vmem %s925_s6, 2048  ;;  %p927_p10 = scmp.lt.s32.totalorder %s1217_s8, %s925_s6 }
  0x5a   : > { %783 = vmatprep.mubr.msk.f32.mxu0 %vm254_vm0, %v246_v21  ;;  %790 = vmatprep.mubr.msk.f32.mxu1 %vm254_vm0, %v248_v23  ;;  %p923_p7 = pneg %p922_p9  ;;  %p928_p0 = scmp.lt.s32.totalorder %s926_s7, %s920_s27 }
  0x5b   : > { %784 = vmatmul.mubr.msk.f32.vlgmr.msra.gmra.mxu0 %vm254_vm0, %v247_v22  ;;  %791 = vmatmul.mubr.msk.f32.vlgmr.msra.gmra.mxu1 %vm254_vm0, %v249_v25 }
  0x5c   : > { %794 = vmatpush3.xpose.msk.msra.mxu0 %vm254_vm0, %v219_v16  ;;  %801 = vmatpush3.xpose.msk.msra.mxu1 %vm254_vm0, %v221_v18  ;;  %p929_p2 = por %p928_p0, %p927_p10 }
  0x5d   : > { %795 = vmatprep.subr.msk.mxu0 %vm254_vm0, %v218_v20  ;;  %802 = vmatprep.subr.msk.mxu1 %vm254_vm0, %v220_v24 }
  0x5e   : > { %797 = vmatprep.mubr.msk.f32.mxu0 %vm254_vm0, %v250_v27  ;;  %804 = vmatprep.mubr.msk.f32.mxu1 %vm254_vm0, %v252_v28  ;;  %p930_p4 = pnand %p929_p2, %p923_p7 }
  0x60   : > { %796 = vmatpush3.xpose.msk.msra.mxu0 %vm254_vm0, %v218_v20  ;;  %803 = vmatpush3.xpose.msk.msra.mxu1 %vm254_vm0, %v220_v24 }
  0x63   : > { %798 = vmatmul.mubr.msk.f32.vlgmr.msra.gmra.mxu0 %vm254_vm0, %v251_v29  ;;  %805 = vmatmul.mubr.msk.f32.vlgmr.msra.gmra.mxu1 %vm254_vm0, %v253_v30 }
 0x11b   : > { %v785_v31 = vpop.f32.mrf.mxu0  ;;  %v792_v32 = vpop.f32.mrf.mxu1 }
 0x11c   : > { %604 = vst.msk [vmem:[%s202_s20 + $0x8] sm:$0xff] %vm254_vm0, %v785_v31  ;;  %606 = vst.msk [vmem:[%s202_s20 + $0x18] sm:$0xff] %vm254_vm0, %v792_v32 }
 0x11d   : > { %v333_v33 = vpop.f32.mrf.mxu0  ;;  %v420_v34 = vpop.f32.mrf.mxu1 }
 0x11e   : > { %603 = vst.msk [vmem:[%s202_s20] sm:$0xff] %vm254_vm0, %v333_v33  ;;  %605 = vst.msk [vmem:[%s202_s20 + $0x10] sm:$0xff] %vm254_vm0, %v420_v34 }
 0x123   : > { %v799_v35 = vpop.f32.mrf.mxu0  ;;  %v806_v36 = vpop.f32.mrf.mxu1 }
 0x124   : > { %608 = vst.msk [vmem:[%s202_s20 + $0x28] sm:$0xff] %vm254_vm0, %v799_v35  ;;  %610 = vst.msk [vmem:[%s202_s20 + $0x38] sm:$0xff] %vm254_vm0, %v806_v36 }
 0x125   : > { %v507_v37 = vpop.f32.mrf.mxu0  ;;  %v594_v38 = vpop.f32.mrf.mxu1 }
 0x126   : > { %607 = vst.msk [vmem:[%s202_s20 + $0x20] sm:$0xff] %vm254_vm0, %v507_v37  ;;  %609 = vst.msk [vmem:[%s202_s20 + $0x30] sm:$0xff] %vm254_vm0, %v594_v38 }
 0x127   : > { %933 = shalt.err (!%p930_p4)
}
 0x128   : > { %s934_s14 = scalar_lea.hbm %s1222_s26, 1024  ;;  %s938_s19 = scalar_lea.hbm %s1271_s2, 2048 }
 0x129   : > { %p935_p3 = scmp.ne.s32.totalorder %s1222_s26, %s934_s14  ;;  %p939_p12 = scmp.lt.s32.totalorder %s1222_s26, %s1271_s2 }
 0x12a   : > { %p940_p8 = scmp.lt.s32.totalorder %s938_s19, %s934_s14 }
 0x12b   : > { %p936_p5 = pnand %p935_p3, %p1281_p1 }
 0x12c   : > { %p941_p6 = por %p940_p8, %p939_p12 }
 0x12d   : > { %p937_p11 = pneg %p936_p5 }
 0x12f   : > { %p942_p13 = pnand %p941_p6, %p937_p11 }
 0x131   : > { %945 = shalt.err (!%p942_p13)
}
 0x132   : > { %s997_s3 = smov 128   ;;  %s998_s5 = smov 8  }
 0x133   : > { %811 = dma.vmem_to_hbm [thread:$0]  (%p1281_p1), %s1217_s8, 1024, %s1222_s26, %s612_s13, %s997_s3, %s997_s3, %s998_s5  }
 0x134 PF: > { %s641_s20 = sand.u32 1, %s976_s9   ;;  %p1282_p9 = scmp.ne.s32.totalorder %s1277_s22, 0 }
 0x135   : > { %p1283_p7 = scmp.ge.s32.totalorder %s988_s12, 2  ;;  %s642_s17 = scalar_lea.sflag [#allocation4], %s641_s20 }
 0x137   : > { %p821_p10 = pnand %p1283_p7, %p1282_p9 }
 0x139   : > { %p822_p0 = pneg %p821_p10 }
 0x13b   : > { %971 = dma.done.wait (%p822_p0), %s642_s17, 1024  }
 0x13c   : > { %973 = vsyncadd (%p822_p0), %s642_s17, 4294966272  ;;  %p18_p2 = scmp.ge.s32.totalorder %s1039_s15, 4   ;;  %s1284_s9 = smov %s980_s10 }
 0x13d   : > { %s1285_s10 = smov %s984_s11  ;;  %s1286_s11 = smov %s1051_s18 }
 0x13e   : > { %s1287_s12 = smov %s1039_s15  ;;  %20 = sbr.rel (!%p18_p2) target bundleno = 7 (0x7), region = 86 }
 0x143   :  { %647 = vsyncpa [#allocation3], 1 }
 0x144   :  { %649 = vsyncpa [#allocation3 + $0x1], 1 }
 0x145   :  { %650 = vsyncpa [#allocation6], 1 }
 0x146   :  { %652 = vsyncpa [#allocation6 + $0x1], 1 }
 0x147   :  { %653 = vsyncpa [#allocation4], 1 }
 0x148   :  { %655 = vsyncpa [#allocation4 + $0x1], 1 }

</bundles_post_ra>
